<compile_context>
chip_gen: v5e
topology: v5e:2x2
jax: 0.10.0
libtpu: 0.0.40
codegen_flags: <defaults>
</compile_context>

<pallas_src>
import functools

import jax
import jax.numpy as jnp
from jax.experimental import pallas as pl
from jax.experimental.pallas import tpu as pltpu

EPS = 0.1
IGNORE_INDEX = -100


def _ls_ce_tile_kernel(x_ref, tgt_ref, out_ref, *, n_true, tile_n, ignore_index):
    """One (TILE_N, C) tile -> one (8, 128) block of partial sums.

    Output block layout (row 0):
      lane 0 = sum_i  -sum_j log_pred[i, j]        (real, unpadded rows)
      lane 1 = sum_i  -log_pred[i, target_i]       (rows with valid target)
      lane 2 = number of valid-target rows
    """
    x = x_ref[...].astype(jnp.float32)            # (TILE_N, C) f32
    tgt = tgt_ref[...]                            # (TILE_N, 1) int32
    tn, c = x.shape

    # Rows of this tile that are real (not wrapper padding).
    row0 = pl.program_id(0) * tile_n
    row_ids = row0 + jax.lax.broadcasted_iota(jnp.int32, (tn, 1), 0)
    row_ok = row_ids < n_true                      # (TILE_N, 1) bool

    # Max-shifted logits; reused for exp, smoothing and the picked-target term.
    m = jnp.max(x, axis=-1, keepdims=True)                               # XLU
    xm = x - m                                                           # <= 0
    p = jnp.exp(xm)                                                      # EUP

    # Row reductions on the otherwise-idle MXU (vector-extended slot):
    # dot against a ones column; HIGHEST precision keeps f32 exactness.
    ones_col = jnp.ones((c, 1), jnp.float32)
    sum_exp = jnp.dot(p, ones_col, preferred_element_type=jnp.float32,
                      precision=jax.lax.Precision.HIGHEST)               # (TILE_N, 1)
    sum_xm = jnp.dot(xm, ones_col, preferred_element_type=jnp.float32,
                     precision=jax.lax.Precision.HIGHEST)                # (TILE_N, 1)

    lse_m = jnp.log(sum_exp)                       # lse - m, small (0 .. log C)

    # Smoothing term: sum_j (lse - x_j) = C*(lse - m) - sum_j (x_j - m);
    # both addends are >= 0 after the shift -> no cancellation.
    smooth_rows = c * lse_m - sum_xm                                     # (TILE_N, 1)
    smooth_part = jnp.sum(jnp.where(row_ok, smooth_rows, 0.0))

    # NLL term: fold `valid` into the target column so the per-element work is
    # a single compare + select over (TILE_N, C).
    valid = tgt != ignore_index                    # padded rows carry ignore_index
    tgt_eff = jnp.where(valid, tgt, -1)            # -1 never matches a class index
    col = jax.lax.broadcasted_iota(jnp.int32, (tn, c), 1)
    picked_m = jnp.sum(jnp.where(col == tgt_eff, xm, 0.0),
                       axis=-1, keepdims=True)     # x[i, tgt_i] - m_i
    nll_part = jnp.sum(jnp.where(valid, lse_m - picked_m, 0.0))
    cnt_part = jnp.sum(valid.astype(jnp.float32))

    # Lane-dense (8, 128) output block: partials in row 0, lanes 0..2, rest 0.
    sub = jax.lax.broadcasted_iota(jnp.int32, (8, 128), 0)
    lane = jax.lax.broadcasted_iota(jnp.int32, (8, 128), 1)
    vals = jnp.where(lane == 1, nll_part,
           jnp.where(lane == 2, cnt_part, smooth_part))
    out_ref[...] = jnp.where((sub == 0) & (lane < 3), vals, 0.0)


def _round_up(v, m):
    return (v + m - 1) // m * m


def label_smoothing_cross_entropy(logits, target, eps=EPS,
                                  ignore_index=IGNORE_INDEX, tile_n=None):
    """logits: (N, C) float32/bfloat16, target: (N,) int. Returns scalar f32 loss.

    Pass logits as bf16 when possible; the kernel upcasts to f32 internally,
    which halves HBM read bytes on the mem-bound v5e/v6e paths.
    """
    n, c = logits.shape
    itemsize = jnp.dtype(logits.dtype).itemsize
    min_rows = 8 * max(1, 4 // itemsize)           # f32 -> 8, bf16 -> 16 (sublane packing)

    # Generation-aware sizing (v5e/v6e: 128 MiB VMEM, v7x: 64 MiB).
    try:
        vmem_cap = int(pltpu.get_tpu_info().vmem_capacity_bytes)
    except Exception:                              # conservative fallback
        vmem_cap = 64 * 1024 * 1024
    vmem_limit = int(vmem_cap * 0.7)

    # Conservative per-row footprint: double-buffered input + ~24 B/elem of
    # in-kernel f32 temporaries (x, xm, p, masked pick, iota, masks).
    bytes_per_row = c * (2 * itemsize + 24)

    if tile_n is None:
        tile_n_fit = max(1, (vmem_limit // 2) // max(bytes_per_row, 1))
        tile_n_target = max(1, (4 * 1024 * 1024) // max(c * itemsize, 1))  # ~4 MiB tile
        tile_n = min(tile_n_fit, tile_n_target)
    tile_n = max(min_rows, _round_up(int(tile_n), min_rows))
    tile_n = min(tile_n, _round_up(n, min_rows))

    # v7x / vocab-scale-C guard: if even this tile exceeds the budget, hand the
    # compiler (almost) all of VMEM instead of forcing spills.
    if tile_n * bytes_per_row > vmem_limit // 2:
        vmem_limit = int(vmem_cap * 0.92)
    # TODO(synk): online-softmax C-tiled path for C large enough that even a
    # min_rows tile overflows v7x's 64 MiB VMEM.

    n_pad = _round_up(n, tile_n)
    if n_pad != n:
        logits = jnp.pad(logits, ((0, n_pad - n), (0, 0)))
        target = jnp.pad(target, (0, n_pad - n), constant_values=ignore_index)
    tgt2d = target.astype(jnp.int32).reshape(n_pad, 1)

    num_tiles = n_pad // tile_n
    kernel = functools.partial(_ls_ce_tile_kernel, n_true=n, tile_n=tile_n,
                               ignore_index=ignore_index)

    # Small, numerous tiles: deepen the input pipeline to hide per-step DMA latency.
    tile_bytes = tile_n * c * itemsize
    if num_tiles >= 4 and tile_bytes < (1 << 20):
        logits_spec = pl.BlockSpec((tile_n, c), lambda i: (i, 0),
                                   pipeline_mode=pl.Buffered(3))
    else:
        logits_spec = pl.BlockSpec((tile_n, c), lambda i: (i, 0))

    parts = pl.pallas_call(
        kernel,
        out_shape=jax.ShapeDtypeStruct((num_tiles * 8, 128), jnp.float32),
        grid_spec=pltpu.PrefetchScalarGridSpec(
            num_scalar_prefetch=0,
            grid=(num_tiles,),
            in_specs=[
                logits_spec,                                   # streamed logits rows
                pl.BlockSpec((tile_n, 1), lambda i: (i, 0)),   # streamed targets
            ],
            out_specs=pl.BlockSpec((8, 128), lambda i: (i, 0)),
        ),
        compiler_params=pltpu.CompilerParams(
            dimension_semantics=("parallel",),
            vmem_limit_bytes=vmem_limit),
        cost_estimate=pl.CostEstimate(
            flops=8 * n_pad * c,
            transcendentals=n_pad * c + n_pad,
            bytes_accessed=n_pad * c * itemsize + n_pad * 4
                           + num_tiles * 8 * 128 * 4),
    )(logits, tgt2d)

    smooth_sum = jnp.sum(parts[:, 0])
    nll_sum = jnp.sum(parts[:, 1])
    valid_cnt = jnp.sum(parts[:, 2])

    smooth_mean = smooth_sum / n              # mean over ALL rows (module semantics)
    nll_mean = nll_sum / valid_cnt            # NaN if no valid targets (matches PyTorch)
    return smooth_mean * (eps / c) + (1.0 - eps) * nll_mean


def _reference(logits, target, eps=EPS, ignore_index=IGNORE_INDEX):
    # Pure-JAX reference mirroring the PyTorch forward (reduction='mean').
    c = logits.shape[-1]
    log_pred = jax.nn.log_softmax(logits.astype(jnp.float32), axis=-1)
    smooth = jnp.mean(-jnp.sum(log_pred, axis=-1))
    valid = target != ignore_index
    picked = jnp.take_along_axis(log_pred, target[:, None].clip(0), axis=-1)[:, 0]
    nll = jnp.sum(jnp.where(valid, -picked, 0.0)) / jnp.sum(valid)
    return smooth * eps / c + (1.0 - eps) * nll


if __name__ == "__main__":
    key = jax.random.PRNGKey(0)
    N, C = 8, 32
    k1, k2 = jax.random.split(key)
    logits = jax.random.normal(k1, (N, C), dtype=jnp.float32)
    target = jax.random.randint(k2, (N,), 0, C, dtype=jnp.int32)
    target = target.at[0].set(IGNORE_INDEX)          # exercise ignore_index

    loss = jax.block_until_ready(label_smoothing_cross_entropy(logits, target))
    ref = _reference(logits, target)
    assert jnp.allclose(loss, ref, atol=1e-5, rtol=1e-5), (loss, ref)

    # bf16 logits (kernel upcasts to f32 internally); reference uses the same
    # bf16-rounded values so the remaining math is f32 on both sides.
    loss_bf = jax.block_until_ready(
        label_smoothing_cross_entropy(logits.astype(jnp.bfloat16), target))
    ref_bf = _reference(logits.astype(jnp.bfloat16).astype(jnp.float32), target)
    assert jnp.allclose(loss_bf, ref_bf, atol=1e-4, rtol=1e-4), (loss_bf, ref_bf)

    # Multi-tile + padded path: N not a multiple of the (forced) tile size.
    N2 = 20
    k3, k4 = jax.random.split(jax.random.PRNGKey(1))
    logits2 = jax.random.normal(k3, (N2, C), dtype=jnp.float32)
    target2 = jax.random.randint(k4, (N2,), 0, C, dtype=jnp.int32)
    target2 = target2.at[3].set(IGNORE_INDEX)
    loss2 = jax.block_until_ready(
        label_smoothing_cross_entropy(logits2, target2, tile_n=8))
    ref2 = _reference(logits2, target2)
    assert jnp.allclose(loss2, ref2, atol=1e-5, rtol=1e-5), (loss2, ref2)

    # Many small tiles -> exercises the pl.Buffered(3) deep-pipeline path.
    N3 = 40
    k5, k6 = jax.random.split(jax.random.PRNGKey(2))
    logits3 = jax.random.normal(k5, (N3, C), dtype=jnp.float32)
    target3 = jax.random.randint(k6, (N3,), 0, C, dtype=jnp.int32)
    loss3 = jax.block_until_ready(
        label_smoothing_cross_entropy(logits3, target3, tile_n=8))
    ref3 = _reference(logits3, target3)
    assert jnp.allclose(loss3, ref3, atol=1e-5, rtol=1e-5), (loss3, ref3)

    print("KERNEL_OK")
</pallas_src>

<mosaic_0001>
module attributes {stable_mosaic.version = 11 : i64} {
  func.func @_ls_ce_tile_kernel(%arg0: i32, %arg1: memref<8x32xf32, #tpu.memory_space<vmem>>, %arg2: memref<8x1xi32, #tpu.memory_space<vmem>>, %arg3: memref<8x128xf32, #tpu.memory_space<vmem>>) attributes {dimension_semantics = [#tpu.dimension_semantics<parallel>], iteration_bounds = array<i64: 1>, scalar_prefetch = 0 : i64, scratch_operands = 0 : i64, tpu.core_type = #tpu.core_type<tc>, window_params = [{transform_indices = @transform_0, window_bounds = array<i64: 8, 32>}, {transform_indices = @transform_1, window_bounds = array<i64: 8, 1>}, {transform_indices = @transform_2, window_bounds = array<i64: 8, 128>}]} {
    %c0 = arith.constant 0 : index
    %c0_0 = arith.constant 0 : index
    %0 = vector.load %arg1[%c0, %c0_0] : memref<8x32xf32, #tpu.memory_space<vmem>>, vector<8x32xf32>
    %c0_1 = arith.constant 0 : index
    %c0_2 = arith.constant 0 : index
    %1 = vector.load %arg2[%c0_1, %c0_2] : memref<8x1xi32, #tpu.memory_space<vmem>>, vector<8x1xi32>
    %c8_i32 = arith.constant 8 : i32
    %2 = arith.muli %arg0, %c8_i32 : i32
    %3 = tpu.iota {dimensions = array<i32: 0>} : vector<8x1xi32>
    %4 = vector.broadcast %2 : i32 to vector<8x1xi32>
    %5 = arith.addi %4, %3 : vector<8x1xi32>
    %c8_i32_3 = arith.constant 8 : i32
    %6 = vector.broadcast %c8_i32_3 : i32 to vector<8x1xi32>
    %7 = arith.cmpi slt, %5, %6 : vector<8x1xi32>
    %cst = arith.constant dense<0xFF800000> : vector<8xf32>
    %8 = vector.multi_reduction <maximumf>, %0, %cst [1] : vector<8x32xf32> to vector<8xf32>
    %9 = vector.shape_cast %8 : vector<8xf32> to vector<8x1xf32>
    %10 = vector.broadcast %9 : vector<8x1xf32> to vector<8x32xf32>
    %11 = arith.subf %0, %10 : vector<8x32xf32>
    %12 = math.exp %11 : vector<8x32xf32>
    %cst_4 = arith.constant 1.000000e+00 : f32
    %13 = vector.broadcast %cst_4 : f32 to vector<32x1xf32>
    %cst_5 = arith.constant dense<0.000000e+00> : vector<8x1xf32>
    %14 = tpu.matmul %12, %13, %cst_5 {dimension_numbers = #tpu.dot_dimension_numbers<[1], [0], [0], [1], [0, 0, 1, 1], [], []>, precision = #tpu.contract_precision<fp32>} : vector<8x32xf32>, vector<32x1xf32>, vector<8x1xf32> -> vector<8x1xf32>
    %cst_6 = arith.constant dense<0.000000e+00> : vector<8x1xf32>
    %15 = tpu.matmul %11, %13, %cst_6 {dimension_numbers = #tpu.dot_dimension_numbers<[1], [0], [0], [1], [0, 0, 1, 1], [], []>, precision = #tpu.contract_precision<fp32>} : vector<8x32xf32>, vector<32x1xf32>, vector<8x1xf32> -> vector<8x1xf32>
    %16 = math.log %14 : vector<8x1xf32>
    %cst_7 = arith.constant 3.200000e+01 : f32
    %17 = vector.broadcast %cst_7 : f32 to vector<8x1xf32>
    %18 = arith.mulf %17, %16 : vector<8x1xf32>
    %19 = arith.subf %18, %15 : vector<8x1xf32>
    %cst_8 = arith.constant 0.000000e+00 : f32
    %20 = vector.broadcast %cst_8 : f32 to vector<8x1xf32>
    %21 = arith.select %7, %19, %20 : vector<8x1xi1>, vector<8x1xf32>
    %22 = vector.shape_cast %21 : vector<8x1xf32> to vector<1x8x1xf32>
    %cst_9 = arith.constant dense<0.000000e+00> : vector<1xf32>
    %23 = vector.multi_reduction <add>, %22, %cst_9 [1, 2] : vector<1x8x1xf32> to vector<1xf32>
    %24 = vector.shape_cast %23 : vector<1xf32> to vector<1x1x1xf32>
    %25 = vector.extract %24[0, 0, 0] : f32 from vector<1x1x1xf32>
    %c-100_i32 = arith.constant -100 : i32
    %26 = vector.broadcast %c-100_i32 : i32 to vector<8x1xi32>
    %27 = arith.cmpi ne, %1, %26 : vector<8x1xi32>
    %c-1_i32 = arith.constant -1 : i32
    %28 = vector.broadcast %c-1_i32 : i32 to vector<8x1xi32>
    %29 = arith.select %27, %1, %28 : vector<8x1xi1>, vector<8x1xi32>
    %30 = tpu.iota {dimensions = array<i32: 1>} : vector<8x32xi32>
    %31 = vector.broadcast %29 : vector<8x1xi32> to vector<8x32xi32>
    %32 = arith.cmpi eq, %30, %31 : vector<8x32xi32>
    %cst_10 = arith.constant 0.000000e+00 : f32
    %33 = vector.broadcast %cst_10 : f32 to vector<8x32xf32>
    %34 = arith.select %32, %11, %33 : vector<8x32xi1>, vector<8x32xf32>
    %cst_11 = arith.constant dense<0.000000e+00> : vector<8xf32>
    %35 = vector.multi_reduction <add>, %34, %cst_11 [1] : vector<8x32xf32> to vector<8xf32>
    %36 = vector.shape_cast %35 : vector<8xf32> to vector<8x1xf32>
    %37 = arith.subf %16, %36 : vector<8x1xf32>
    %cst_12 = arith.constant 0.000000e+00 : f32
    %38 = vector.broadcast %cst_12 : f32 to vector<8x1xf32>
    %39 = arith.select %27, %37, %38 : vector<8x1xi1>, vector<8x1xf32>
    %40 = vector.shape_cast %39 : vector<8x1xf32> to vector<1x8x1xf32>
    %cst_13 = arith.constant dense<0.000000e+00> : vector<1xf32>
    %41 = vector.multi_reduction <add>, %40, %cst_13 [1, 2] : vector<1x8x1xf32> to vector<1xf32>
    %42 = vector.shape_cast %41 : vector<1xf32> to vector<1x1x1xf32>
    %43 = vector.extract %42[0, 0, 0] : f32 from vector<1x1x1xf32>
    %44 = arith.extui %27 : vector<8x1xi1> to vector<8x1xi32>
    %45 = arith.sitofp %44 : vector<8x1xi32> to vector<8x1xf32>
    %46 = vector.shape_cast %45 : vector<8x1xf32> to vector<1x8x1xf32>
    %cst_14 = arith.constant dense<0.000000e+00> : vector<1xf32>
    %47 = vector.multi_reduction <add>, %46, %cst_14 [1, 2] : vector<1x8x1xf32> to vector<1xf32>
    %48 = vector.shape_cast %47 : vector<1xf32> to vector<1x1x1xf32>
    %49 = vector.extract %48[0, 0, 0] : f32 from vector<1x1x1xf32>
    %50 = tpu.iota {dimensions = array<i32: 0>} : vector<8x128xi32>
    %51 = tpu.iota {dimensions = array<i32: 1>} : vector<8x128xi32>
    %c1_i32 = arith.constant 1 : i32
    %52 = vector.broadcast %c1_i32 : i32 to vector<8x128xi32>
    %53 = arith.cmpi eq, %51, %52 : vector<8x128xi32>
    %c2_i32 = arith.constant 2 : i32
    %54 = vector.broadcast %c2_i32 : i32 to vector<8x128xi32>
    %55 = arith.cmpi eq, %51, %54 : vector<8x128xi32>
    %56 = vector.broadcast %49 : f32 to vector<8x128xf32>
    %57 = vector.broadcast %25 : f32 to vector<8x128xf32>
    %58 = arith.select %55, %56, %57 : vector<8x128xi1>, vector<8x128xf32>
    %59 = vector.broadcast %43 : f32 to vector<8x128xf32>
    %60 = arith.select %53, %59, %58 : vector<8x128xi1>, vector<8x128xf32>
    %c0_i32 = arith.constant 0 : i32
    %61 = vector.broadcast %c0_i32 : i32 to vector<8x128xi32>
    %62 = arith.cmpi eq, %50, %61 : vector<8x128xi32>
    %c3_i32 = arith.constant 3 : i32
    %63 = vector.broadcast %c3_i32 : i32 to vector<8x128xi32>
    %64 = arith.cmpi slt, %51, %63 : vector<8x128xi32>
    %65 = arith.andi %62, %64 : vector<8x128xi1>
    %cst_15 = arith.constant 0.000000e+00 : f32
    %66 = vector.broadcast %cst_15 : f32 to vector<8x128xf32>
    %67 = arith.select %65, %60, %66 : vector<8x128xi1>, vector<8x128xf32>
    %c0_16 = arith.constant 0 : index
    %c0_17 = arith.constant 0 : index
    %68 = vector.load %arg3[%c0_16, %c0_17] : memref<8x128xf32, #tpu.memory_space<vmem>>, vector<8x128xf32>
    tpu.vector_store %arg3[%c0_16, %c0_17], %67 {strides = array<i32>} : memref<8x128xf32, #tpu.memory_space<vmem>>, vector<8x128xf32>,
    return
  }
  func.func @transform_0(%arg0: i32) -> (i32, i32) {
    %c0_i32 = arith.constant 0 : i32
    %c0_i32_0 = arith.constant 0 : i32
    return %arg0, %c0_i32 : i32, i32
  }
  func.func @transform_1(%arg0: i32) -> (i32, i32) {
    %c0_i32 = arith.constant 0 : i32
    %c0_i32_0 = arith.constant 0 : i32
    return %arg0, %c0_i32 : i32, i32
  }
  func.func @transform_2(%arg0: i32) -> (i32, i32) {
    %c0_i32 = arith.constant 0 : i32
    %c0_i32_0 = arith.constant 0 : i32
    return %arg0, %c0_i32 : i32, i32
  }
}

</mosaic_0001>

<bundles_post_ra>
// kernel: tpu_custom_call.1
= control target key start
LH: loop header
LB: loop body
LE: loop exit
PB: predicated region body
PF: predicated region fallthrough
CT: control target
= control target key end

     0   :  { %vm20_vm0 = vcmask 261120   ;;  %s478_s0 = inlined_call_operand.vmem [shape: f32[8,32], index: 0, kind: input, shape index: {}]   ;;  %s479_s1 = inlined_call_operand.vmem [shape: s32[8,1], index: 1, kind: input, shape index: {}]   ;;  %s480_s2 = inlined_call_operand.hbm [shape: f32[8,128], index: 2, kind: output, shape index: {}]  }
   0x1   :  { %v12_v0 = vld [vmem:[%s478_s0] sm:$0xff] }
   0x2   :  { %7 = vsyncpa [#allocation3], 0  ;;  %v21_v1 = vsel %vm20_vm0, %v12_v0, -inf  ;;  %v421_v2 = vmov 0   ;;  %v447_v3 = vld [vmem:[%s479_s1] sm:$0xff]  ;;  %v422_v5 = vmov 1.0   ;;  %v15_v13 = vlaneseq }
   0x3   :  { %390 = vset.pattern.permute.xlu0 %v421_v2  ;;  %vm315_vm1 = vcmp.ne.s32.totalorder %v447_v3, 4294967196  ;;  %110 = vmatpush.msra.mxu3 %v422_v5  ;;  %v423_v6 = vmov 0.0   ;;  %vm304_vm3 = vcmask 7168   ;;  %s424_s13 = smov [#allocation2]   ;;  %s370_s18 = sshll.u32 %s480_s2, 4  ;;  %s371_s18 = int_to_ptr.hbm [resolvable:$true] %s370_s18 }
   0x4   :  { %22 = vmax.xlane.f32.xlu0 %v21_v1  ;;  %v316_v4 = vsel %vm315_vm1, %v447_v3, 4294967295  ;;  %70 = vmatpush.msra.mxu1 %v423_v6  ;;  %v460_v17 = vand.u32 127, %v15_v13  ;;  %v379_v59 = vsel %vm315_vm1, 1.0, %v423_v6  ;;  %s368_s14 = sshll.u32 %s424_s13, 4  ;;  %s369_s14 = int_to_ptr.vmem [resolvable:$true] %s368_s14 }
   0x5   :  { %42 = vmatpush.msra.mxu0 %v422_v5  ;;  %91 = vmatpush.msra.mxu2 %v423_v6  ;;  %v341_v60 = vsel %vm304_vm3, %v379_v59, 0.0 }
   0x6   :  { %111 = vmatpush.msra.mxu3 %v422_v5  ;;  %136 = vmatpush.msrb.mxu1 %v423_v6  ;;  %vm359_vm5 = vcmp.lt.s32.totalorder %v460_v17, 3  ;;  %vm352_vm6 = vcmp.eq.s32.totalorder %v460_v17, 2  ;;  %vm351_vm7 = vcmp.eq.s32.totalorder %v460_v17, 1 }
   0x7   :  { %154 = vmatpush.msrb.mxu2 %v422_v5  ;;  %43 = vmatpush.msra.mxu0 %v422_v5 }
   0x8   :  { %112 = vmatpush.msra.mxu3 %v422_v5 }
   0x9   :  { %155 = vmatpush.msrb.mxu2 %v422_v5  ;;  %44 = vmatpush.msra.mxu0 %v422_v5 }
   0xa   :  { %113 = vmatpush.msra.mxu3 %v422_v5 }
   0xb   :  { %156 = vmatpush.msrb.mxu2 %v422_v5  ;;  %45 = vmatpush.msra.mxu0 %v422_v5 }
   0xc   :  { %206 = vmatpush.msrb.mxu3 %v423_v6 }
   0xd   :  { %157 = vmatpush.msrb.mxu2 %v422_v5  ;;  %178 = vmatpush.msrb.mxu0 %v422_v5 }
   0xf   :  { %179 = vmatpush.msrb.mxu0 %v422_v5 }
  0x11   :  { %180 = vmatpush.msrb.mxu0 %v422_v5 }
  0x13   :  { %181 = vmatpush.msrb.mxu0 %v422_v5 }
  0x18   :  { %320 = vperm.xlu0 %390, %v316_v4  }
  0x77   :  { %v23_v7 = vpop.xlane.xlu0 %22 }
  0x78   :  { %v24_v8 = vsub.f32 %v12_v0, %v23_v7 }
  0x7a   :  { %v25_v9 = vmul.f32 1.442695, %v24_v8  ;;  %v164_v10 = vsel %vm20_vm0, %v24_v8, 0 }
  0x7b   :  { %v182_v14 = vand.u32 4294901760, %v164_v10 }
  0x7c   :  { %391 = vpow2.f32 %v25_v9 }
  0x7d   :  { %v183_v18 = vsub.f32 %v164_v10, %v182_v14 }
  0x7f   :  { %v184_v24 = vand.u32 4294901760, %v183_v18 }
  0x81   :  { %v185_v26 = vsub.f32 %v183_v18, %v184_v24 }
  0x82   :  { %v392_v11 = vpop.eup %391 }
  0x83   :  { %v28_v12 = vsel %vm20_vm0, %v392_v11, 0  ;;  %v186_v27 = vand.u32 4294901760, %v185_v26 }
  0x84   :  { %v46_v15 = vand.u32 4294901760, %v28_v12 }
  0x86   :  { %72 = vmatmul.f32.vlgmr.msra.gmra.mxu1 %v46_v15  ;;  %v47_v16 = vsub.f32 %v28_v12, %v46_v15 }
  0x87   :  { %227 = vmatpush.msra.mxu1 %v423_v6 }
  0x88   :  { %94 = vmatmul.f32.vlgmr.msra.gmra.mxu2 %v47_v16  ;;  %v48_v19 = vand.u32 4294901760, %v47_v16 }
  0x89   :  { %246 = vmatpush.msra.mxu2 %v422_v5 }
  0x8a   :  { %117 = vmatmul.f32.vlgmr.msra.gmra.mxu3 %v48_v19  ;;  %v321_v20 = vpop.permute.xlu0 %320  ;;  %v49_v21 = vsub.f32 %v47_v16, %v48_v19 }
  0x8b   :  { %vm322_vm2 = vcmp.eq.s32.totalorder %v460_v17, %v321_v20  ;;  %247 = vmatpush.msra.mxu2 %v422_v5  ;;  %290 = vmatpush.msra.mxu3 %v422_v5  ;;  %v16_v20 = vshrl.u32 %v15_v13, 7 }
  0x8c   :  { %v50_v22 = vand.u32 4294901760, %v49_v21  ;;  %v323_v23 = vsel %vm322_vm2, %v24_v8, 0.0 }
  0x8d   :  { %v324_v25 = vsel %vm20_vm0, %v323_v23, 0.0  ;;  %248 = vmatpush.msra.mxu2 %v422_v5  ;;  %291 = vmatpush.msra.mxu3 %v422_v5  ;;  %vm358_vm4 = vcmp.eq.s32.totalorder %v16_v20, 0 }
  0x8e   :  { %51 = vmatmul.f32.vlgmr.msra.gmra.mxu0 %v50_v22  ;;  %138 = vmatmul.f32.vlgmr.msrb.gmra.mxu1 %v46_v15  ;;  %vm360_vm8 = vmand %vm358_vm4, %vm359_vm5 }
  0x8f   :  { %325 = vadd.xlane.f32.xlu1 %v324_v25  ;;  %249 = vmatpush.msra.mxu2 %v422_v5 }
  0x90   :  { %159 = vmatmul.f32.vlgmr.msrb.gmra.mxu2 %v46_v15  ;;  %292 = vmatpush.msra.mxu3 %v422_v5 }
  0x91   :  { %272 = vmatpush.msra.mxu0 %v423_v6 }
  0x92   :  { %208 = vmatmul.f32.vlgmr.msrb.gmra.mxu3 %v182_v14 }
  0x93   :  { %293 = vmatpush.msra.mxu3 %v422_v5 }
  0x96   :  { %187 = vmatmul.f32.vlgmr.msrb.gmra.mxu0 %v186_v27  ;;  %230 = vmatmul.f32.vlgmr.msra.gmra.mxu1 %v183_v18 }
  0x98   :  { %253 = vmatmul.f32.vlgmr.msra.gmra.mxu2 %v184_v24 }
  0x9a   :  { %295 = vmatmul.f32.vlgmr.msra.gmra.mxu3 %v182_v14 }
  0x9e   :  { %274 = vmatmul.f32.vlgmr.msra.gmra.mxu0 %v182_v14 }
 0x102   :  { %v326_v49 = vpop.xlane.xlu1 %325 }
 0x103   :  { %v73_v28 = vpop.f32.mrf.mxu1 }
 0x10b   :  { %v52_v29 = vpop.f32.mrf.mxu0  ;;  %v95_v30 = vpop.f32.mrf.mxu2 }
 0x10c   :  { %v74_v31 = vadd.f32 %v73_v28, %v52_v29  ;;  %v139_v34 = vpop.f32.mrf.mxu1 }
 0x10d   :  { %v118_v32 = vpop.f32.mrf.mxu3 }
 0x10e   :  { %v96_v33 = vadd.f32 %v95_v30, %v74_v31 }
 0x110   :  { %v119_v35 = vadd.f32 %v118_v32, %v96_v33 }
 0x112   :  { %v140_v36 = vadd.f32 %v139_v34, %v119_v35 }
 0x113   :  { %v160_v37 = vpop.f32.mrf.mxu2  ;;  %v188_v38 = vpop.f32.mrf.mxu0 }
 0x114   :  { %v161_v39 = vadd.f32 %v160_v37, %v140_v36  ;;  %v231_v42 = vpop.f32.mrf.mxu1 }
 0x115   :  { %v209_v40 = vpop.f32.mrf.mxu3 }
 0x116   :  { %393 = vlog2.f32 %v161_v39  ;;  %v210_v41 = vadd.f32 %v209_v40, %v188_v38 }
 0x118   :  { %v232_v43 = vadd.f32 %v231_v42, %v210_v41 }
 0x11b   :  { %v254_v44 = vpop.f32.mrf.mxu2  ;;  %v275_v48 = vpop.f32.mrf.mxu0 }
 0x11c   :  { %v394_v45 = vpop.eup %393  ;;  %v255_v46 = vadd.f32 %v254_v44, %v232_v43 }
 0x11d   :  { %v300_v47 = vmul.f32 0.6931472, %v394_v45  ;;  %v296_v51 = vpop.f32.mrf.mxu3 }
 0x11e   :  { %v276_v50 = vadd.f32 %v275_v48, %v255_v46 }
 0x11f   :  { %v327_v52 = vsub.f32 %v300_v47, %v326_v49  ;;  %v301_v53 = vmul.f32 32.0, %v300_v47 }
 0x120   :  { %v297_v54 = vadd.f32 %v296_v51, %v276_v50 }
 0x121   :  { %v328_v55 = vsel %vm315_vm1, %v327_v52, 0.0 }
 0x122   :  { %v329_v56 = vsel %vm304_vm3, %v328_v55, 0.0  ;;  %v302_v57 = vsub.f32 %v301_v53, %v297_v54 }
 0x123   :  { %330 = vadd.xlane.f32.xlu2 %v329_v56 }
 0x124   :  { %v305_v58 = vsel %vm304_vm3, %v302_v57, 0.0 }
 0x125   :  { %306 = vadd.xlane.f32.xlu1 %v305_v58 }
 0x12b   :  { %342 = vadd.xlane.f32.xlu2 %v341_v60 }
 0x196   :  { %v331_v61 = vpop.xlane.xlu2 %330 }
 0x197   :  { %v332_v62 = vrot.slane %v331_v61, 4 }
 0x198   :  { %v307_v63 = vpop.xlane.xlu1 %306 }
 0x199   :  { %v333_v0 = vadd.f32 %v332_v62, %v331_v61  ;;  %v308_v1 = vrot.slane %v307_v63, 4 }
 0x19b   :  { %v334_v2 = vrot.slane %v333_v0, 2  ;;  %v309_v4 = vadd.f32 %v308_v1, %v307_v63 }
 0x19d   :  { %v310_v5 = vrot.slane %v309_v4, 2  ;;  %v335_v7 = vadd.f32 %v334_v2, %v333_v0 }
 0x19e   :  { %v343_v8 = vpop.xlane.xlu2 %342 }
 0x19f   :  { %v344_v9 = vrot.slane %v343_v8, 4  ;;  %v311_v10 = vadd.f32 %v310_v5, %v309_v4  ;;  %v336_v11 = vrot.slane %v335_v7, 1 }
 0x1a1   :  { %v345_v12 = vadd.f32 %v344_v9, %v343_v8  ;;  %v312_v14 = vrot.slane %v311_v10, 1  ;;  %v337_v6 = vadd.f32 %v336_v11, %v335_v7 }
 0x1a3   :  { %v346_v15 = vrot.slane %v345_v12, 2  ;;  %v313_v3 = vadd.f32 %v312_v14, %v311_v10 }
 0x1a5   :  { %v347_v16 = vadd.f32 %v346_v15, %v345_v12  ;;  %380 = vpush %v313_v3 }
 0x1a6   :  { %382 = vpush %v337_v6 }
 0x1a7   :  { %v348_v18 = vrot.slane %v347_v16, 1 }
 0x1a9   :  { %v349_v19 = vadd.f32 %v348_v18, %v347_v16 }
 0x1ab   :  { %384 = vpush %v349_v19 }
 0x1d6   :  { %s381_s0 = spop %380 }
 0x1d7   :  { %s383_s1 = spop %382  ;;  %v354_v21 = vstv %s381_s0 }
 0x1d8   :  { %v356_v13 = vstv %s383_s1 }
 0x1dc   :  { %s385_s15 = spop %384 }
 0x1dd   :  { %v353_v22 = vstv %s385_s15 }
 0x1de   :  { %v355_v23 = vsel %vm352_vm6, %v353_v22, %v354_v21 }
 0x1df   :  { %v357_v24 = vsel %vm351_vm7, %v356_v13, %v355_v23 }
 0x1e0   :  { %v361_v25 = vsel %vm360_vm8, %v357_v24, 0.0 }
 0x1e1   :  { %362 = vst [vmem:[#allocation2] sm:$0xff] %v361_v25 }
 0x1e2   :  { %373 = dma.vmem_to_hbm [thread:$0]  %s369_s14, 128, %s371_s18, [#allocation3]  }
 0x1e3   :  { %419 = dma.done.wait [#allocation3], 128  }
 0x1e4   :  { %420 = vsyncadd [#allocation3], 4294967168 }
 0x1e5   :  { %378 = vsyncpa [#allocation3], 1 }

</bundles_post_ra>
